<compile_context>
chip_gen: v7x
topology: tpu7x:2x2x1
jax: 0.10.0
libtpu: 0.0.40
codegen_flags: <defaults>
</compile_context>

<pallas_src>
import functools

import jax
import jax.numpy as jnp
from jax import lax
from jax.experimental import pallas as pl
from jax.experimental.pallas import tpu as pltpu

P_DROP = 0.05
_DROP_THRESH = int(P_DROP * (1 << 32))   # drop element iff hash < thresh


def _round_up(v: int, m: int) -> int:
    return (v + m - 1) // m * m


def _vmem_capacity_bytes() -> int:
    try:
        info = pltpu.get_tpu_info()
        cap = getattr(info, "vmem_capacity_bytes", None)
        if cap:
            return int(cap)
    except Exception:
        pass
    return 64 * 1024 * 1024   # conservative fallback = v7x physical VMEM


def _fmix32(z):
    # murmur3 fmix32 avalanche on uint32 (plain VPU integer ops).
    u32 = jnp.uint32
    z = z ^ (z >> 16)
    z = z * u32(0x85EBCA6B)
    z = z ^ (z >> 13)
    z = z * u32(0xC2B2AE35)
    z = z ^ (z >> 16)
    return z


def _lora_kernel(seed_ref, x_ref, a_t_ref, b_t_ref, o_ref, h_ref, *,
                 training: bool, tm: int, tn: int, out_dim: int,
                 b_resident: bool):
    j = pl.program_id(1)

    # First MXU pass (h = x @ A^T) runs once per row tile; the persistent VMEM
    # scratch is reused for every output-column tile of the same rows.
    @pl.when(j == 0)
    def _():
        h_ref[...] = jnp.dot(x_ref[...].astype(jnp.bfloat16), a_t_ref[...],
                             preferred_element_type=jnp.float32)

    if b_resident:
        col_start = pl.multiple_of(j * tn, 128)
        b_blk = b_t_ref[:, pl.ds(col_start, tn)]      # slice of resident B_T
    else:
        b_blk = b_t_ref[...]                           # per-j B_T tile

    y = jnp.dot(h_ref[...].astype(jnp.bfloat16), b_blk,
                preferred_element_type=jnp.float32)    # (tm, tn) f32

    if training:
        u32 = jnp.uint32
        seed = seed_ref[0].astype(u32)
        row0 = (pl.program_id(0) * tm).astype(u32)
        col0 = (j * tn).astype(u32)
        # Narrow iotas: hash rows on (tm,1) and cols on (1,tn), then one
        # broadcast-add + short avalanche on the full tile.
        rows = lax.broadcasted_iota(jnp.int32, (tm, 1), 0).astype(u32) + row0
        cols = lax.broadcasted_iota(jnp.int32, (1, tn), 1).astype(u32) + col0
        r = _fmix32(rows * u32(out_dim) + seed * u32(0x9E3779B9))
        c = _fmix32(cols ^ (seed * u32(0x85EBCA77)))
        z = r + c
        z = z ^ (z >> 16)
        z = z * u32(0x85EBCA6B)
        z = z ^ (z >> 13)
        keep = z >= u32(_DROP_THRESH)
        y = jnp.where(keep, y * jnp.float32(1.0 / (1.0 - P_DROP)),
                      jnp.float32(0.0))

    o_ref[...] = y.astype(jnp.bfloat16)


def lora_forward(x, a_t, b_t, seed, *, training=True, tm=512, tn=2048):
    """LoRA forward.

    x:   (batch, seq, in_dim) float array (f32 or bf16).
    a_t: (in_dim, rank)  = linear_A.weight.T
    b_t: (rank, out_dim) = linear_B.weight.T
    Returns (batch, seq, out_dim) bfloat16.
    """
    B, S, in_dim = x.shape
    rank = a_t.shape[1]
    out_dim = b_t.shape[1]
    M = B * S

    # Reshape is metadata-only (row-major); x stays in its HBM dtype and the
    # bf16 cast happens per-tile inside the kernel (no extra wrapper HBM pass).
    x2 = x.reshape(M, in_dim)

    # Weights are tiny; wrapper-side cast / pad is negligible traffic.
    a_bf = a_t.astype(jnp.bfloat16)
    b_bf = b_t.astype(jnp.bfloat16)

    # Pad rank up to a lane-dense 128 (zero pad -> identical result).
    rank_p = _round_up(max(rank, 128), 128)
    if rank_p != rank:
        a_bf = jnp.pad(a_bf, ((0, 0), (0, rank_p - rank)))
        b_bf = jnp.pad(b_bf, ((0, rank_p - rank), (0, 0)))

    out_alloc = _round_up(out_dim, 128)            # lane-dense output stores

    # Row tile: full M if it fits, else tm (multiple of 8).  Ragged M is
    # handled by a cdiv grid + Pallas edge masking (no padding of x).
    tm_eff = M if M <= tm else _round_up(tm, 8)
    tn_eff = min(_round_up(tn, 128), out_alloc)

    def _b_cols_for(tn_):
        return _round_up(out_alloc, tn_)

    def _is_resident(tn_):
        # Keep full B_T resident in VMEM (single DMA) when it is small.
        return 2 * rank_p * _b_cols_for(tn_) * 2 <= 8 * 1024 * 1024

    x_item = jnp.dtype(x2.dtype).itemsize

    def footprint(tm_, tn_):
        b_vmem_cols = _b_cols_for(tn_) if _is_resident(tn_) else tn_
        return (2 * tm_ * in_dim * x_item       # x tiles (double-buffered)
                + 2 * tm_ * tn_ * 2             # out tiles (bf16)
                + 2 * in_dim * rank_p * 2       # A_T
                + 2 * rank_p * b_vmem_cols * 2  # B_T
                + tm_ * rank_p * 4              # h scratch (f32)
                + 3 * tm_ * tn_ * 4)            # f32 y + dropout temporaries

    # Clamp against the device's physical VMEM minus headroom (64 MiB on v7x,
    # 128 MiB on v5e/v6e); shrink tiles if they do not fit.
    budget = _vmem_capacity_bytes() - 8 * 1024 * 1024
    while footprint(tm_eff, tn_eff) > budget and tm_eff > 64:
        tm_eff = max(64, (tm_eff // 2) // 8 * 8)
    while footprint(tm_eff, tn_eff) > budget and tn_eff > 256:
        tn_eff = max(256, (tn_eff // 2) // 128 * 128)

    b_cols = _b_cols_for(tn_eff)
    b_resident = _is_resident(tn_eff)
    if b_cols != out_dim:
        b_bf = jnp.pad(b_bf, ((0, 0), (0, b_cols - out_dim)))

    grid = (pl.cdiv(M, tm_eff), b_cols // tn_eff)
    seed_arr = jnp.asarray([seed], dtype=jnp.int32)

    need = footprint(tm_eff, tn_eff)
    vmem_limit = int(min(budget, max(need + need // 4, 32 * 1024 * 1024)))

    kernel = functools.partial(_lora_kernel, training=training,
                               tm=tm_eff, tn=tn_eff, out_dim=out_dim,
                               b_resident=b_resident)

    cost = pl.CostEstimate(
        flops=2 * M * in_dim * rank_p + 2 * M * rank_p * b_cols,
        transcendentals=0,
        bytes_accessed=(M * in_dim * x_item + M * out_alloc * 2
                        + in_dim * rank_p * 2 + rank_p * b_cols * 2),
    )

    in_specs = [
        pl.BlockSpec((tm_eff, in_dim), lambda i, j, seed: (i, 0)),
        pl.BlockSpec((in_dim, rank_p), lambda i, j, seed: (0, 0)),
    ]
    if b_resident:
        # Constant index map -> B_T fetched once, never re-DMA'd.
        in_specs.append(pl.BlockSpec((rank_p, b_cols), lambda i, j, seed: (0, 0)))
    else:
        in_specs.append(pl.BlockSpec((rank_p, tn_eff), lambda i, j, seed: (0, j)))

    out2 = pl.pallas_call(
        kernel,
        out_shape=jax.ShapeDtypeStruct((M, out_alloc), jnp.bfloat16),
        grid_spec=pltpu.PrefetchScalarGridSpec(
            num_scalar_prefetch=1,             # seed lands in SMEM
            grid=grid,
            in_specs=in_specs,
            out_specs=pl.BlockSpec((tm_eff, tn_eff), lambda i, j, seed: (i, j)),
            scratch_shapes=[pltpu.VMEM((tm_eff, rank_p), jnp.float32)],
        ),
        compiler_params=pltpu.CompilerParams(
            # Row axis sharded across TensorCores on v7x (disjoint x reads);
            # column axis is the inner sequential loop (enables h reuse and
            # the x-block revisit optimization).
            dimension_semantics=("parallel", "arbitrary"),
            vmem_limit_bytes=vmem_limit,
        ),
        cost_estimate=cost,
    )(seed_arr, x2, a_bf, b_bf)

    if out_alloc != out_dim:
        out2 = out2[:, :out_dim]
    return out2.reshape(B, S, out_dim)


def init_lora_params(key, in_dim, rank, out_dim):
    # Matches nn.init.normal_(A.weight, std=1/rank); nn.init.zeros_(B.weight).
    # PyTorch Linear weight is (out_features, in_features); we store transposed.
    a = jax.random.normal(key, (rank, in_dim), dtype=jnp.float32) * (1.0 / rank)
    b = jnp.zeros((out_dim, rank), dtype=jnp.float32)
    return a.T, b.T  # A_T: (in_dim, rank), B_T: (rank, out_dim)


if __name__ == "__main__":
    key = jax.random.PRNGKey(0)
    k_x, k_a, k_b = jax.random.split(key, 3)

    B, S, in_dim, rank, out_dim = 2, 16, 32, 8, 32
    x = jax.random.normal(k_x, (B, S, in_dim), dtype=jnp.float32)
    a_t, b_t = init_lora_params(k_a, in_dim, rank, out_dim)

    # (1) Exact module init: B == 0 -> output must be all zeros even with dropout.
    out = jax.block_until_ready(lora_forward(x, a_t, b_t, seed=42, training=True))
    assert out.shape == (B, S, out_dim)
    assert out.dtype == jnp.bfloat16
    assert bool(jnp.all(out == 0))

    # (2) Numerics check with a non-zero B, eval mode (no dropout), vs pure-JAX ref.
    b_t2 = jax.random.normal(k_b, (rank, out_dim), dtype=jnp.float32) * 0.1
    out_eval = jax.block_until_ready(lora_forward(x, a_t, b_t2, seed=42, training=False))
    xb = x.reshape(B * S, in_dim).astype(jnp.bfloat16).astype(jnp.float32)
    ab = a_t.astype(jnp.bfloat16).astype(jnp.float32)
    bb = b_t2.astype(jnp.bfloat16).astype(jnp.float32)
    h = xb @ ab
    ref = (h.astype(jnp.bfloat16).astype(jnp.float32) @ bb).astype(jnp.bfloat16)
    ref = ref.reshape(B, S, out_dim)
    assert jnp.allclose(out_eval.astype(jnp.float32), ref.astype(jnp.float32),
                        rtol=5e-2, atol=5e-2)

    # (3) Dropout sanity: roughly 5% of elements zeroed in training mode.
    out_train = jax.block_until_ready(lora_forward(x, a_t, b_t2, seed=42, training=True))
    drop_frac = float(jnp.mean(((out_train == 0) & (out_eval != 0)).astype(jnp.float32)))
    assert 0.005 < drop_frac < 0.15, f"unexpected dropout fraction {drop_frac}"

    print("KERNEL_OK")
</pallas_src>

<mosaic_0001>
module attributes {stable_mosaic.version = 11 : i64} {
  func.func @_lora_kernel(%arg0: i32, %arg1: i32, %arg2: memref<1xi32, #tpu.memory_space<smem>>, %arg3: memref<32x32xf32, #tpu.memory_space<vmem>>, %arg4: memref<32x128xbf16, #tpu.memory_space<vmem>>, %arg5: memref<128x128xbf16, #tpu.memory_space<vmem>>, %arg6: memref<32x128xbf16, #tpu.memory_space<vmem>>, %arg7: memref<32x128xf32, #tpu.memory_space<vmem>>) attributes {dimension_semantics = [#tpu.dimension_semantics<parallel>, #tpu.dimension_semantics<arbitrary>], iteration_bounds = array<i64: 1, 1>, scalar_prefetch = 1 : i64, scratch_operands = 1 : i64, tpu.core_type = #tpu.core_type<tc>, window_params = [{transform_indices = @transform_0, window_bounds = array<i64: 32, 32>}, {pipeline_mode = #tpu.pipeline_mode<synchronous>, transform_indices = @transform_1, window_bounds = array<i64: 32, 128>}, {pipeline_mode = #tpu.pipeline_mode<synchronous>, transform_indices = @transform_2, window_bounds = array<i64: 128, 128>}, {transform_indices = @transform_3, window_bounds = array<i64: 32, 128>}]} {
    %c0_i32 = arith.constant 0 : i32
    %0 = arith.cmpi eq, %arg1, %c0_i32 : i32
    %1 = arith.extui %0 : i1 to i32
    %c0_i32_0 = arith.constant 0 : i32
    %2 = arith.cmpi ne, %1, %c0_i32_0 : i32
    scf.if %2 {
      %c0_19 = arith.constant 0 : index
      %c0_20 = arith.constant 0 : index
      %72 = vector.load %arg3[%c0_19, %c0_20] : memref<32x32xf32, #tpu.memory_space<vmem>>, vector<32x32xf32>
      %73 = arith.truncf %72 : vector<32x32xf32> to vector<32x32xbf16>
      %c0_21 = arith.constant 0 : index
      %c0_22 = arith.constant 0 : index
      %74 = vector.load %arg4[%c0_21, %c0_22] : memref<32x128xbf16, #tpu.memory_space<vmem>>, vector<32x128xbf16>
      %cst_23 = arith.constant dense<0.000000e+00> : vector<32x128xf32>
      %75 = tpu.matmul %73, %74, %cst_23 {dimension_numbers = #tpu.dot_dimension_numbers<[1], [0], [0], [1], [0, 0, 1, 1], [], []>} : vector<32x32xbf16>, vector<32x128xbf16>, vector<32x128xf32> -> vector<32x128xf32>
      %c0_24 = arith.constant 0 : index
      %c0_25 = arith.constant 0 : index
      %76 = vector.load %arg7[%c0_24, %c0_25] : memref<32x128xf32, #tpu.memory_space<vmem>>, vector<32x128xf32>
      tpu.vector_store %arg7[%c0_24, %c0_25], %75 {strides = array<i32>} : memref<32x128xf32, #tpu.memory_space<vmem>>, vector<32x128xf32>,
    } else {
    }
    %c128_i32 = arith.constant 128 : i32
    %3 = arith.muli %arg1, %c128_i32 : i32
    %4 = tpu.assume_multiple %3, 128 : i32
    %c0 = arith.constant 0 : index
    %5 = arith.index_cast %4 : i32 to index
    %6 = vector.load %arg5[%c0, %5] : memref<128x128xbf16, #tpu.memory_space<vmem>>, vector<128x128xbf16>
    %c0_1 = arith.constant 0 : index
    %c0_2 = arith.constant 0 : index
    %7 = vector.load %arg7[%c0_1, %c0_2] : memref<32x128xf32, #tpu.memory_space<vmem>>, vector<32x128xf32>
    %8 = arith.truncf %7 : vector<32x128xf32> to vector<32x128xbf16>
    %cst = arith.constant dense<0.000000e+00> : vector<32x128xf32>
    %9 = tpu.matmul %8, %6, %cst {dimension_numbers = #tpu.dot_dimension_numbers<[1], [0], [0], [1], [0, 0, 1, 1], [], []>} : vector<32x128xbf16>, vector<128x128xbf16>, vector<32x128xf32> -> vector<32x128xf32>
    %c0_3 = arith.constant 0 : index
    %10 = memref.load %arg2[%c0_3] : memref<1xi32, #tpu.memory_space<smem>>
    %c32_i32 = arith.constant 32 : i32
    %11 = arith.muli %arg0, %c32_i32 : i32
    %c128_i32_4 = arith.constant 128 : i32
    %12 = arith.muli %arg1, %c128_i32_4 : i32
    %13 = tpu.iota {dimensions = array<i32: 0>} : vector<32x1xi32>
    %14 = vector.broadcast %11 : i32 to vector<32x1xi32>
    %15 = arith.addi %13, %14 : vector<32x1xi32>
    %16 = tpu.iota {dimensions = array<i32: 1>} : vector<1x128xi32>
    %17 = vector.broadcast %12 : i32 to vector<1x128xi32>
    %18 = arith.addi %16, %17 : vector<1x128xi32>
    %c32_i32_5 = arith.constant 32 : i32
    %19 = vector.broadcast %c32_i32_5 : i32 to vector<32x1xi32>
    %20 = arith.muli %15, %19 : vector<32x1xi32>
    %c-1640531527_i32 = arith.constant -1640531527 : i32
    %21 = arith.muli %10, %c-1640531527_i32 : i32
    %22 = vector.broadcast %21 : i32 to vector<32x1xi32>
    %23 = arith.addi %20, %22 : vector<32x1xi32>
    %c16_i32 = arith.constant 16 : i32
    %24 = vector.broadcast %c16_i32 : i32 to vector<32x1xi32>
    %25 = arith.shrui %23, %24 : vector<32x1xi32>
    %26 = arith.xori %23, %25 : vector<32x1xi32>
    %c-2048144789_i32 = arith.constant -2048144789 : i32
    %27 = vector.broadcast %c-2048144789_i32 : i32 to vector<32x1xi32>
    %28 = arith.muli %26, %27 : vector<32x1xi32>
    %c13_i32 = arith.constant 13 : i32
    %29 = vector.broadcast %c13_i32 : i32 to vector<32x1xi32>
    %30 = arith.shrui %28, %29 : vector<32x1xi32>
    %31 = arith.xori %28, %30 : vector<32x1xi32>
    %c-1028477387_i32 = arith.constant -1028477387 : i32
    %32 = vector.broadcast %c-1028477387_i32 : i32 to vector<32x1xi32>
    %33 = arith.muli %31, %32 : vector<32x1xi32>
    %c16_i32_6 = arith.constant 16 : i32
    %34 = vector.broadcast %c16_i32_6 : i32 to vector<32x1xi32>
    %35 = arith.shrui %33, %34 : vector<32x1xi32>
    %36 = arith.xori %33, %35 : vector<32x1xi32>
    %c-2048144777_i32 = arith.constant -2048144777 : i32
    %37 = arith.muli %10, %c-2048144777_i32 : i32
    %38 = vector.broadcast %37 : i32 to vector<1x128xi32>
    %39 = arith.xori %18, %38 : vector<1x128xi32>
    %c16_i32_7 = arith.constant 16 : i32
    %40 = vector.broadcast %c16_i32_7 : i32 to vector<1x128xi32>
    %41 = arith.shrui %39, %40 : vector<1x128xi32>
    %42 = arith.xori %39, %41 : vector<1x128xi32>
    %c-2048144789_i32_8 = arith.constant -2048144789 : i32
    %43 = vector.broadcast %c-2048144789_i32_8 : i32 to vector<1x128xi32>
    %44 = arith.muli %42, %43 : vector<1x128xi32>
    %c13_i32_9 = arith.constant 13 : i32
    %45 = vector.broadcast %c13_i32_9 : i32 to vector<1x128xi32>
    %46 = arith.shrui %44, %45 : vector<1x128xi32>
    %47 = arith.xori %44, %46 : vector<1x128xi32>
    %c-1028477387_i32_10 = arith.constant -1028477387 : i32
    %48 = vector.broadcast %c-1028477387_i32_10 : i32 to vector<1x128xi32>
    %49 = arith.muli %47, %48 : vector<1x128xi32>
    %c16_i32_11 = arith.constant 16 : i32
    %50 = vector.broadcast %c16_i32_11 : i32 to vector<1x128xi32>
    %51 = arith.shrui %49, %50 : vector<1x128xi32>
    %52 = arith.xori %49, %51 : vector<1x128xi32>
    %53 = vector.broadcast %36 : vector<32x1xi32> to vector<32x128xi32>
    %54 = vector.broadcast %52 : vector<1x128xi32> to vector<32x128xi32>
    %55 = arith.addi %53, %54 : vector<32x128xi32>
    %c16_i32_12 = arith.constant 16 : i32
    %56 = vector.broadcast %c16_i32_12 : i32 to vector<32x128xi32>
    %57 = arith.shrui %55, %56 : vector<32x128xi32>
    %58 = arith.xori %55, %57 : vector<32x128xi32>
    %c-2048144789_i32_13 = arith.constant -2048144789 : i32
    %59 = vector.broadcast %c-2048144789_i32_13 : i32 to vector<32x128xi32>
    %60 = arith.muli %58, %59 : vector<32x128xi32>
    %c13_i32_14 = arith.constant 13 : i32
    %61 = vector.broadcast %c13_i32_14 : i32 to vector<32x128xi32>
    %62 = arith.shrui %60, %61 : vector<32x128xi32>
    %63 = arith.xori %60, %62 : vector<32x128xi32>
    %c214748364_i32 = arith.constant 214748364 : i32
    %64 = vector.broadcast %c214748364_i32 : i32 to vector<32x128xi32>
    %65 = arith.cmpi uge, %63, %64 : vector<32x128xi32>
    %cst_15 = arith.constant 1.05263162 : f32
    %66 = vector.broadcast %cst_15 : f32 to vector<32x128xf32>
    %67 = arith.mulf %9, %66 : vector<32x128xf32>
    %cst_16 = arith.constant 0.000000e+00 : f32
    %68 = vector.broadcast %cst_16 : f32 to vector<32x128xf32>
    %69 = arith.select %65, %67, %68 : vector<32x128xi1>, vector<32x128xf32>
    %70 = arith.truncf %69 : vector<32x128xf32> to vector<32x128xbf16>
    %c0_17 = arith.constant 0 : index
    %c0_18 = arith.constant 0 : index
    %71 = vector.load %arg6[%c0_17, %c0_18] : memref<32x128xbf16, #tpu.memory_space<vmem>>, vector<32x128xbf16>
    tpu.vector_store %arg6[%c0_17, %c0_18], %70 {strides = array<i32>} : memref<32x128xbf16, #tpu.memory_space<vmem>>, vector<32x128xbf16>,
    return
  }
  func.func @transform_0(%arg0: i32, %arg1: i32, %arg2: memref<1xi32, #tpu.memory_space<smem>>) -> (i32, i32) {
    %c0_i32 = arith.constant 0 : i32
    %c0_i32_0 = arith.constant 0 : i32
    return %arg0, %c0_i32 : i32, i32
  }
  func.func @transform_1(%arg0: i32, %arg1: i32, %arg2: memref<1xi32, #tpu.memory_space<smem>>) -> (i32, i32) {
    %c0_i32 = arith.constant 0 : i32
    %c0_i32_0 = arith.constant 0 : i32
    %c0_i32_1 = arith.constant 0 : i32
    return %c0_i32, %c0_i32_0 : i32, i32
  }
  func.func @transform_2(%arg0: i32, %arg1: i32, %arg2: memref<1xi32, #tpu.memory_space<smem>>) -> (i32, i32) {
    %c0_i32 = arith.constant 0 : i32
    %c0_i32_0 = arith.constant 0 : i32
    %c0_i32_1 = arith.constant 0 : i32
    return %c0_i32, %c0_i32_0 : i32, i32
  }
  func.func @transform_3(%arg0: i32, %arg1: i32, %arg2: memref<1xi32, #tpu.memory_space<smem>>) -> (i32, i32) {
    %c0_i32 = arith.constant 0 : i32
    return %arg0, %arg1 : i32, i32
  }
}

</mosaic_0001>

<bundles_post_ra>
// kernel: tpu_custom_call.1
= control target key start
LH: loop header
LB: loop body
LE: loop exit
PB: predicated region body
PF: predicated region fallthrough
CT: control target
= control target key end

     0   :  { %10 = vsyncpa [#allocation6], 0  ;;  %s695_s0 = inlined_call_operand.<no memory space> [shape: s32[1], index: 0, kind: input, shape index: {}]   ;;  %s696_s1 = inlined_call_operand.hbm [shape: f32[32,32], index: 1, kind: input, shape index: {}]   ;;  %s697_s2 = inlined_call_operand.hbm [shape: bf16[32,128], index: 2, kind: input, shape index: {}]   ;;  %s698_s3 = inlined_call_operand.hbm [shape: bf16[128,128], index: 3, kind: input, shape index: {}]   ;;  %s699_s4 = inlined_call_operand.hbm [shape: bf16[32,128], index: 4, kind: output, shape index: {}]  }
   0x1   :  { %11 = vsyncpa [#allocation9], 0 }
   0x2   :  { %12 = vsyncpa [#allocation7], 0  ;;  %s599_s15 = smov [#allocation8]   ;;  %s505_s19 = scalar_lea.hbm %s697_s2, 256 }
   0x3   :  { %s30_s16 = sshll.u32 %s599_s15, 4  ;;  %p506_p0 = scmp.ne.s32.totalorder %s697_s2, %s505_s19  ;;  %s31_s16 = int_to_ptr.vmem [resolvable:$true] %s30_s16 }
   0x4   :  { %p509_p1 = scmp.lt.u32.totalorder %s505_s19, %s697_s2 }
   0x6   :  { %p511_p2 = pnand %p509_p1, %p506_p0 }
   0x8   :  { %514 = shalt.err (!%p511_p2)
}
   0x9   :  { %s515_s24 = scalar_lea.vmem %s31_s16, 256  ;;  %p520_p4 = scmp.lt.s32.totalorder %s31_s16, %s31_s16 }
   0xa   :  { %p516_p3 = scmp.ne.s32.totalorder %s31_s16, %s515_s24  ;;  %p521_p5 = scmp.lt.s32.totalorder %s515_s24, %s515_s24 }
   0xc   :  { %p522_p6 = por %p521_p5, %p520_p4 }
   0xe   :  { %p523_p7 = pnand %p522_p6, %p516_p3 }
  0x10   :  { %526 = shalt.err (!%p523_p7)
}
  0x11   :  { %s600_s25 = smov 64   ;;  %s601_s26 = smov 4  }
  0x12   :  { %36 = dma.hbm_to_vmem [thread:$0]  %s697_s2, 256, %s31_s16, [#allocation9], %s600_s25, %s600_s25, %s601_s26  }
  0x13   :  { %s602_s29 = smov [#allocation5]   ;;  %s527_s7 = scalar_lea.hbm %s696_s1, 512 }
  0x14   :  { %s18_s30 = sshll.u32 %s602_s29, 4  ;;  %p528_p8 = scmp.ne.s32.totalorder %s696_s1, %s527_s7  ;;  %s19_s30 = int_to_ptr.vmem [resolvable:$true] %s18_s30 }
  0x15   :  { %p531_p9 = scmp.lt.u32.totalorder %s527_s7, %s696_s1 }
  0x17   :  { %p533_p10 = pnand %p531_p9, %p528_p8 }
  0x19   :  { %536 = shalt.err (!%p533_p10)
}
  0x1a   :  { %s537_s12 = scalar_lea.vmem %s19_s30, 512  ;;  %p542_p12 = scmp.lt.s32.totalorder %s19_s30, %s19_s30 }
  0x1b   :  { %p538_p11 = scmp.ne.s32.totalorder %s19_s30, %s537_s12  ;;  %p543_p13 = scmp.lt.s32.totalorder %s537_s12, %s537_s12 }
  0x1d   :  { %p544_p0 = por %p543_p13, %p542_p12 }
  0x1f   :  { %p545_p1 = pnand %p544_p0, %p538_p11 }
  0x21   :  { %548 = shalt.err (!%p545_p1)
}
  0x22   :  { %s603_s2 = smov 128   ;;  %s604_s13 = smov 8  }
  0x23   :  { %24 = dma.hbm_to_vmem [thread:$0]  %s696_s1, 512, %s19_s30, [#allocation6], %s603_s2, %s603_s2, %s604_s13  }
  0x24   :  { %s605_s16 = smov [#allocation10]   ;;  %s549_s20 = scalar_lea.hbm %s698_s3, 1024 }
  0x25   :  { %s42_s17 = sshll.u32 %s605_s16, 4  ;;  %p550_p2 = scmp.ne.s32.totalorder %s698_s3, %s549_s20  ;;  %s43_s17 = int_to_ptr.vmem [resolvable:$true] %s42_s17 }
  0x26   :  { %p553_p3 = scmp.lt.u32.totalorder %s549_s20, %s698_s3 }
  0x28   :  { %p555_p4 = pnand %p553_p3, %p550_p2 }
  0x2a   :  { %558 = shalt.err (!%p555_p4)
}
  0x2b   :  { %s559_s27 = scalar_lea.vmem %s43_s17, 1024  ;;  %p564_p6 = scmp.lt.s32.totalorder %s43_s17, %s43_s17 }
  0x2c   :  { %p560_p5 = scmp.ne.s32.totalorder %s43_s17, %s559_s27  ;;  %p565_p7 = scmp.lt.s32.totalorder %s559_s27, %s559_s27 }
  0x2e   :  { %p566_p8 = por %p565_p7, %p564_p6 }
  0x30   :  { %p567_p9 = pnand %p566_p8, %p560_p5 }
  0x32   :  { %570 = shalt.err (!%p567_p9)
}
  0x33   :  { %48 = dma.hbm_to_vmem [thread:$0]  %s698_s3, 1024, %s43_s17, [#allocation9], %s600_s25, %s600_s25, %s601_s26  }
  0x34   :  { %593 = dma.done.wait [#allocation6], 512  }
  0x35   :  { %594 = vsyncadd [#allocation6], 4294966784 }
  0x36   :  { %595 = dma.done.wait [#allocation9], 1280  }
  0x37   :  { %596 = vsyncadd [#allocation9], 4294966016  ;;  %v495_v0 = vld [vmem:[#allocation8] sm:$0xff]   ;;  %v496_v1 = vld [vmem:[#allocation8 + $0x8] sm:$0xff]   ;;  %vm85_vm0 = vcmask 261120   ;;  %v271_v22 = vlaneseq }
  0x38   :  { %459 = vmatprep.subr.bf16.mxu0 %v495_v0  ;;  %v63_v2 = vld [vmem:[#allocation5] sm:$0xff]  ;;  %v64_v3 = vld [vmem:[#allocation5 + $0x8] sm:$0xff]  ;;  %v65_v4 = vld [vmem:[#allocation5 + $0x10] sm:$0xff]  ;;  %s289_s30 = smul.u32 2654435769, %s695_s0 }
  0x39   :  { %460 = vmatpush3.bf16.msra.mxu0 %v495_v0  ;;  %v67_v5 = vpack.c.bf16 %v64_v3, %v63_v2  ;;  %v66_v6 = vld [vmem:[#allocation5 + $0x18] sm:$0xff]  ;;  %v497_v7 = vld [vmem:[#allocation10] sm:$0xff]   ;;  %v499_v10 = vld [vmem:[#allocation10 + $0x10] sm:$0xff]   ;;  %v272_v23 = vshrl.u32 %v271_v22, 7  ;;  %s327_s7 = smul.u32 2246822519, %s695_s0 }
  0x3a   :  { %461 = vmatprep.subr.bf16.mxu0 %v496_v1  ;;  %v498_v8 = vld [vmem:[#allocation10 + $0x8] sm:$0xff]   ;;  %v68_v9 = vpack.c.bf16 %v66_v6, %v65_v4  ;;  %467 = vmatprep.subr.bf16.mxu1 %v497_v7  ;;  %v500_v11 = vld [vmem:[#allocation10 + $0x18] sm:$0xff]   ;;  %v501_v12 = vld [vmem:[#allocation10 + $0x20] sm:$0xff]   ;;  %v282_v27 = vand.u32 127, %v271_v22  ;;  %v290_v29 = vstv %s289_s30  ;;  %s606_s0 = smov [#allocation11]  }
  0x3b   :  { %463 = vmatprep.mubr.msk.bf16.mxu0 %vm85_vm0, %v67_v5  ;;  %468 = vmatpush3.bf16.msra.mxu1 %v497_v7  ;;  %v502_v13 = vld [vmem:[#allocation10 + $0x28] sm:$0xff]   ;;  %v503_v14 = vld [vmem:[#allocation10 + $0x30] sm:$0xff]   ;;  %v504_v15 = vld [vmem:[#allocation10 + $0x38] sm:$0xff]   ;;  %v274_v24 = vadd.s32 16, %v272_v23  ;;  %v275_v25 = vadd.s32 24, %v272_v23  ;;  %v273_v26 = vadd.s32 8, %v272_v23  ;;  %v328_v30 = vstv %s327_s7 }
  0x3c   :  { %469 = vmatprep.subr.bf16.mxu1 %v498_v8  ;;  %v285_v31 = vmul.u32 32, %v272_v23  ;;  %v329_v35 = vxor.u32 %v328_v30, %v282_v27  ;;  %s399_s8 = sshll.u32 %s606_s0, 4  ;;  %s400_s8 = int_to_ptr.vmem [resolvable:$true] %s399_s8 }
  0x3d   :  { %462 = vmatpush3.bf16.msra.mxu0 %v496_v1  ;;  %v287_v28 = vmul.u32 32, %v274_v24  ;;  %v288_v32 = vmul.u32 32, %v275_v25  ;;  %s571_s9 = scalar_lea.vmem %s400_s8, 256  ;;  %p576_p11 = scmp.lt.s32.totalorder %s400_s8, %s400_s8 }
  0x3e   :  { %v286_v33 = vmul.u32 32, %v273_v26  ;;  %v291_v36 = vadd.s32 %v290_v29, %v285_v31  ;;  %v330_v40 = vshrl.u32 %v329_v35, 16  ;;  %p572_p10 = scmp.ne.s32.totalorder %s400_s8, %s571_s9  ;;  %p577_p12 = scmp.lt.s32.totalorder %s571_s9, %s571_s9 }
  0x3f   :  { %470 = vmatpush3.bf16.msra.mxu1 %v498_v8  ;;  %v293_v34 = vadd.s32 %v290_v29, %v287_v28  ;;  %v294_v37 = vadd.s32 %v290_v29, %v288_v32 }
  0x40   :  { %464 = vmatmul.mubr.msk.bf16.vlgmr.msra.gmra.mrb[0].mxu0 %vm85_vm0, %v68_v9  ;;  %471 = vmatprep.subr.bf16.mxu1 %v499_v10  ;;  %v292_v38 = vadd.s32 %v290_v29, %v286_v33  ;;  %v295_v41 = vshrl.u32 %v291_v36, 16  ;;  %v331_v45 = vxor.u32 %v330_v40, %v329_v35  ;;  %p578_p13 = por %p577_p12, %p576_p11 }
  0x41   :  { %v297_v39 = vshrl.u32 %v293_v34, 16  ;;  %v298_v42 = vshrl.u32 %v294_v37, 16 }
  0x42   :  { %v296_v43 = vshrl.u32 %v292_v38, 16  ;;  %v299_v46 = vxor.u32 %v295_v41, %v291_v36  ;;  %v332_v50 = vmul.u32 2246822507, %v331_v45  ;;  %p579_p0 = pnand %p578_p13, %p572_p10 }
  0x43   :  { %472 = vmatpush3.bf16.msra.mxu1 %v499_v10  ;;  %v301_v44 = vxor.u32 %v297_v39, %v293_v34  ;;  %v302_v47 = vxor.u32 %v298_v42, %v294_v37 }
  0x44   :  { %473 = vmatprep.subr.bf16.mxu1 %v500_v11  ;;  %v300_v48 = vxor.u32 %v296_v43, %v292_v38  ;;  %v303_v51 = vmul.u32 2246822507, %v299_v46  ;;  %v333_v55 = vshrl.u32 %v332_v50, 13 }
  0x45   :  { %v305_v49 = vmul.u32 2246822507, %v301_v44  ;;  %v306_v52 = vmul.u32 2246822507, %v302_v47 }
  0x46   :  { %v304_v53 = vmul.u32 2246822507, %v300_v48  ;;  %v307_v56 = vshrl.u32 %v303_v51, 13  ;;  %v334_v60 = vxor.u32 %v333_v55, %v332_v50 }
  0x47   :  { %474 = vmatpush3.bf16.msra.mxu1 %v500_v11  ;;  %v309_v54 = vshrl.u32 %v305_v49, 13  ;;  %v310_v57 = vshrl.u32 %v306_v52, 13 }
  0x48   :  { %475 = vmatprep.subr.bf16.mxu1 %v501_v12  ;;  %v308_v58 = vshrl.u32 %v304_v53, 13  ;;  %v311_v61 = vxor.u32 %v307_v56, %v303_v51  ;;  %v335_v1 = vmul.u32 3266489909, %v334_v60 }
  0x49   :  { %v313_v59 = vxor.u32 %v309_v54, %v305_v49  ;;  %v314_v62 = vxor.u32 %v310_v57, %v306_v52 }
  0x4a   :  { %v312_v63 = vxor.u32 %v308_v58, %v304_v53  ;;  %v315_v2 = vmul.u32 3266489909, %v311_v61  ;;  %v336_v6 = vshrl.u32 %v335_v1, 16 }
  0x4b   :  { %476 = vmatpush3.bf16.msra.mxu1 %v501_v12  ;;  %v317_v0 = vmul.u32 3266489909, %v313_v59  ;;  %v318_v3 = vmul.u32 3266489909, %v314_v62 }
  0x4c   :  { %477 = vmatprep.subr.bf16.mxu1 %v502_v13  ;;  %v316_v4 = vmul.u32 3266489909, %v312_v63  ;;  %v319_v7 = vshrl.u32 %v315_v2, 16  ;;  %v337_v11 = vxor.u32 %v336_v6, %v335_v1 }
  0x4d   :  { %v321_v5 = vshrl.u32 %v317_v0, 16  ;;  %v322_v8 = vshrl.u32 %v318_v3, 16 }
  0x4e   :  { %v320_v9 = vshrl.u32 %v316_v4, 16  ;;  %v323_v12 = vxor.u32 %v319_v7, %v315_v2 }
  0x4f   :  { %478 = vmatpush3.bf16.msra.mxu1 %v502_v13  ;;  %v325_v10 = vxor.u32 %v321_v5, %v317_v0  ;;  %v326_v13 = vxor.u32 %v322_v8, %v318_v3 }
  0x50   :  { %479 = vmatprep.subr.bf16.mxu1 %v503_v14 }
  0x53   :  { %480 = vmatpush3.bf16.msra.mxu1 %v503_v14  ;;  %v324_v14 = vxor.u32 %v320_v9, %v316_v4 }
  0x54   :  { %481 = vmatprep.subr.bf16.mxu1 %v504_v15 }
  0x57   :  { %482 = vmatpush3.bf16.msra.mxu1 %v504_v15  ;;  %v340_v15 = vadd.s32 %v337_v11, %v325_v10 }
 0x113   :  { %v465_v16 = vpop.f32.mrb[0].mxu0 }
 0x114   :  { %v126_v17 = vpop.f32.mrb[1].mxu0 }
 0x115   :  { %v466_v18 = vpop.f32.mrb[2].mxu0 }
 0x116   :  { %v171_v19 = vpack.c.bf16 %v466_v18, %v465_v16  ;;  %v129_v20 = vpop.f32.mrb[3].mxu0  ;;  %v338_v16 = vadd.s32 %v337_v11, %v323_v12  ;;  %v339_v18 = vadd.s32 %v337_v11, %v324_v14 }
 0x117   :  { %v170_v21 = vpack.c.bf16 %v129_v20, %v126_v17  ;;  %v341_v17 = vadd.s32 %v337_v11, %v326_v13 }
 0x118   :  { %v342_v20 = vshrl.u32 %v338_v16, 16  ;;  %v343_v22 = vshrl.u32 %v339_v18, 16 }
 0x119   :  { %483 = vmatprep.mubr.bf16.mxu1 %v170_v21  ;;  %v345_v21 = vshrl.u32 %v341_v17, 16 }
 0x11a   :  { %484 = vmatmul.mubr.bf16.vlgmr.msra.gmra.mrb[0].mxu1 %v171_v19  ;;  %v344_v19 = vshrl.u32 %v340_v15, 16  ;;  %v346_v24 = vxor.u32 %v342_v20, %v338_v16  ;;  %v347_v26 = vxor.u32 %v343_v22, %v339_v18 }
 0x11b   :  { %v349_v25 = vxor.u32 %v345_v21, %v341_v17 }
 0x11c   :  { %v348_v23 = vxor.u32 %v344_v19, %v340_v15  ;;  %v350_v28 = vmul.u32 2246822507, %v346_v24  ;;  %v351_v30 = vmul.u32 2246822507, %v347_v26 }
 0x11d   :  { %v353_v29 = vmul.u32 2246822507, %v349_v25 }
 0x11e   :  { %v352_v27 = vmul.u32 2246822507, %v348_v23  ;;  %v354_v32 = vshrl.u32 %v350_v28, 13  ;;  %v355_v34 = vshrl.u32 %v351_v30, 13 }
 0x11f   :  { %v357_v33 = vshrl.u32 %v353_v29, 13 }
 0x120   :  { %v356_v31 = vshrl.u32 %v352_v27, 13  ;;  %v358_v36 = vxor.u32 %v354_v32, %v350_v28  ;;  %v359_v38 = vxor.u32 %v355_v34, %v351_v30 }
 0x121   :  { %v361_v37 = vxor.u32 %v357_v33, %v353_v29 }
 0x122   :  { %v360_v35 = vxor.u32 %v356_v31, %v352_v27  ;;  %vm362_vm2 = vcmp.ge.u32.totalorder %v358_v36, 214748364  ;;  %vm363_vm4 = vcmp.ge.u32.totalorder %v359_v38, 214748364 }
 0x123   :  { %vm365_vm3 = vcmp.ge.u32.totalorder %v361_v37, 214748364 }
 0x124   :  { %vm364_vm1 = vcmp.ge.u32.totalorder %v360_v35, 214748364 }
 0x1ed   :  { %v485_v39 = vpop.f32.mrb[0].mxu1 }
 0x1ee   :  { %v368_v40 = vmul.f32 1.0526316, %v485_v39  ;;  %v254_v41 = vpop.f32.mrb[1].mxu1 }
 0x1ef   :  { %v366_v42 = vmul.f32 1.0526316, %v254_v41  ;;  %v486_v43 = vpop.f32.mrb[2].mxu1 }
 0x1f0   :  { %v369_v44 = vmul.f32 1.0526316, %v486_v43  ;;  %v257_v45 = vpop.f32.mrb[3].mxu1  ;;  %v372_v47 = vsel %vm364_vm1, %v368_v40, 0.0 }
 0x1f1   :  { %v367_v46 = vmul.f32 1.0526316, %v257_v45  ;;  %v370_v49 = vsel %vm362_vm2, %v366_v42, 0.0 }
 0x1f2   :  { %v373_v48 = vsel %vm365_vm3, %v369_v44, 0.0 }
 0x1f3   :  { %v442_v50 = vpack.c.bf16 %v373_v48, %v372_v47  ;;  %v371_v51 = vsel %vm363_vm4, %v367_v46, 0.0 }
 0x1f4   :  { %v437_v52 = vpack.c.bf16 %v371_v51, %v370_v49 }
 0x1f5   :  { %444 = vst [vmem:[#allocation11 + $0x8] sm:$0xff] %v442_v50  }
 0x1f6   :  { %438 = vst [vmem:[#allocation11] sm:$0xff] %v437_v52  }
 0x1f7   :  { %582 = shalt.err (!%p579_p0)
}
 0x1f8   :  { %s583_s12 = scalar_lea.hbm %s699_s4, 256 }
 0x1f9   :  { %p584_p1 = scmp.ne.s32.totalorder %s699_s4, %s583_s12  ;;  %p587_p2 = scmp.lt.u32.totalorder %s583_s12, %s699_s4 }
 0x1fb   :  { %p589_p3 = pnand %p587_p2, %p584_p1 }
 0x1fd   :  { %592 = shalt.err (!%p589_p3)
}
 0x1fe   :  { %405 = dma.vmem_to_hbm [thread:$0]  %s400_s8, 256, %s699_s4, [#allocation7], %s600_s25, %s600_s25, %s601_s26  }
 0x1ff   :  { %597 = dma.done.wait [#allocation7], 256  }
 0x200   :  { %598 = vsyncadd [#allocation7], 4294967040 }
 0x201   :  { %409 = vsyncpa [#allocation6], 1 }
 0x202   :  { %410 = vsyncpa [#allocation9], 1 }
 0x203   :  { %411 = vsyncpa [#allocation7], 1 }

</bundles_post_ra>
